<compile_context>
chip_gen: v5e
topology: v5e:2x2
jax: 0.10.0
libtpu: 0.0.40
codegen_flags: <defaults>
</compile_context>

<pallas_src>
import jax
import jax.numpy as jnp
from jax.experimental import pallas as pl
from jax.experimental.pallas import tpu as pltpu

# Constraint tables from the PyTorch module.
_LOSS_RECIPE = [(0, 0, 0), (0, 2, 0), (1, 1, 1), (1, 2, 1), (2, 0, 0),
                (2, 1, 1), (2, 2, 2), (2, 3, 3), (3, 2, 3)]
_NEG_LOSS_RECIPE = [(0, 3, 1), (0, 3, 2), (1, 3, 0), (1, 3, 2),
                    (3, 0, 1), (3, 0, 2), (3, 1, 0), (3, 1, 2)]

_LANES = 128
_SUBLANES = 8
_MIN_LOG_ARG = -80.0        # below this, log1mexp(x) == 0.0 at f32 precision
_PAD_VALUE = -1.0           # filler for which every hinge term is exactly 0
_TINY = 1.1754944e-38       # FLT_MIN: floors complement sums before log()


def _log1mexp(x):
    """Numerically stable log(1 - exp(x)) for x <= 0 (cf. Maechler 2012).

    Written with exp/log/div only (no expm1/log1p primitives) so it lowers on
    every Pallas TPU generation.  Kahan's compensation
        expm1(x) = (exp(x) - 1) * x / log(exp(x))
    recovers the precision expm1 would provide where exp(x) rounds near 1.
    """
    xc = jnp.maximum(x, _MIN_LOG_ARG)      # guard exp() -> 0 inside the ratio
    ex = jnp.exp(xc)
    exm1 = ex - 1.0
    em1 = jnp.where(exm1 == 0.0, xc, exm1 * xc / jnp.log(ex))
    return jnp.log(-em1)


def _box_loss_kernel(x_ref, o_ref):
    f32 = jnp.float32
    vAB = x_ref[0].astype(f32)
    vBA = x_ref[1].astype(f32)
    vBC = x_ref[2].astype(f32)
    vCB = x_ref[3].astype(f32)
    vAC = x_ref[4].astype(f32)
    vCA = x_ref[5].astype(f32)

    lAB, lBA = _log1mexp(vAB), _log1mexp(vBA)
    lBC, lCB = _log1mexp(vBC), _log1mexp(vCB)
    lAC, lCA = _log1mexp(vAC), _log1mexp(vCA)

    # create_probabilities(v1, v2) -> [PC, CP, CR, NR]
    pAB = (vAB + lBA, lAB + vBA, vAB + vBA, lAB + lBA)
    pBC = (vBC + lCB, lBC + vCB, vBC + vCB, lBC + lCB)
    pAC = (vAC + lCA, lAC + vCA, vAC + vCA, lAC + lCA)

    # The four pAC entries are a normalized 2x2 joint (their exps sum to 1),
    # so log1mexp(pAC[i]) == log(sum_{j != i} exp(pAC[j])).  4 exps + 3 logs
    # replaces three full _log1mexp calls on the EUP-bound path.  The sums
    # are floored at FLT_MIN so extreme tails never hit log(0).
    e = tuple(jnp.exp(p) for p in pAC)
    nAC = {
        0: jnp.log(jnp.maximum(e[1] + e[2] + e[3], _TINY)),
        1: jnp.log(jnp.maximum(e[0] + e[2] + e[3], _TINY)),
        2: jnp.log(jnp.maximum(e[0] + e[1] + e[3], _TINY)),
    }

    loss = jnp.zeros_like(vAB)
    for xy, yz, xz in _LOSS_RECIPE:
        loss = loss + jnp.maximum(0.0, pAB[xy] + pBC[yz] - pAC[xz])
    for xy, yz, xz in _NEG_LOSS_RECIPE:
        loss = loss + jnp.maximum(0.0, pAB[xy] + pBC[yz] - nAC[xz])

    # Padded slots (all volumes == _PAD_VALUE) yield strictly negative hinge
    # arguments, so they contribute exactly 0 -- no masking needed here.
    # Per-step reduction: fold sublane-tile groups with plain VPU adds into a
    # lane-dense (8, 128) partial block (unmasked stores, no XLU reduce).
    tr = loss.shape[0]
    o_ref[...] = loss.reshape(tr // _SUBLANES, _SUBLANES, _LANES).sum(axis=0)


def box_same_category_loss(vol_AB, vol_BA, vol_BC, vol_CB, vol_AC, vol_CA,
                           *, max_tile_rows=512):
    """Pallas implementation of BoxSameCategoryLoss.forward. Returns a scalar."""
    # TODO(synk): forward-only; pallas_call has no autodiff -- wrap in a
    # jax.custom_vjp (pure-JAX backward) before using as a training loss.
    vols = [jnp.ravel(jnp.asarray(v)).astype(jnp.float32)
            for v in (vol_AB, vol_BA, vol_BC, vol_CB, vol_AC, vol_CA)]
    n = int(vols[0].shape[0])
    assert 0 < n < 2**31

    rows = -(-n // _LANES)                       # lane-dense rows needed
    rows = -(-rows // _SUBLANES) * _SUBLANES     # round up to 8 sublanes
    tile_rows = min(max_tile_rows, rows)         # both multiples of 8
    # v7x megacore: keep at least two grid steps so both TensorCores get work.
    if rows // tile_rows < 2 and rows >= 2 * _SUBLANES:
        tile_rows = max(_SUBLANES, (rows // 2) // _SUBLANES * _SUBLANES)
    rows_padded = -(-rows // tile_rows) * tile_rows
    num_tiles = rows_padded // tile_rows
    pad = rows_padded * _LANES - n

    # Pad with -1.0: with all six volumes equal to -1, every one of the 17
    # hinge arguments is strictly negative, so padded slots add exactly 0.
    stacked = jnp.stack(
        [jnp.pad(v, (0, pad), constant_values=_PAD_VALUE)
            .reshape(rows_padded, _LANES) for v in vols])

    # VMEM budget: 6 double-buffered input planes plus ~30 block-sized f32
    # temporaries.  32 MiB covers the 512-row default with margin and stays
    # within every generation's physical VMEM (v7x: 64 MiB per TC).
    plane_bytes = tile_rows * _LANES * 4
    vmem_limit = int(min(max(32 << 20, 64 * plane_bytes), 100 << 20))

    partials = pl.pallas_call(
        _box_loss_kernel,
        out_shape=jax.ShapeDtypeStruct((num_tiles * _SUBLANES, _LANES),
                                       jnp.float32),
        grid_spec=pltpu.PrefetchScalarGridSpec(
            num_scalar_prefetch=0,
            grid=(num_tiles,),
            # Single stacked operand -> one pipelined DMA descriptor per step.
            in_specs=[pl.BlockSpec((6, tile_rows, _LANES),
                                   lambda i: (0, i, 0))],
            out_specs=pl.BlockSpec((_SUBLANES, _LANES), lambda i: (i, 0)),
        ),
        compiler_params=pltpu.CompilerParams(
            dimension_semantics=("parallel",),
            vmem_limit_bytes=vmem_limit),
    )(stacked)
    return jnp.sum(partials)


# ----------------------------------------------------------------------------
# Pure-JAX reference mirroring the PyTorch module (textbook stable log1mexp).
# ----------------------------------------------------------------------------
def _log1mexp_reference(x):
    return jnp.where(x > -0.6931471805599453,
                     jnp.log(-jnp.expm1(x)),
                     jnp.log1p(-jnp.exp(x)))


def _reference(vol_AB, vol_BA, vol_BC, vol_CB, vol_AC, vol_CA):
    l1me = _log1mexp_reference

    def probs(v1, v2):
        return [v1 + l1me(v2), l1me(v1) + v2, v1 + v2, l1me(v1) + l1me(v2)]

    pAB = probs(vol_AB, vol_BA)
    pBC = probs(vol_BC, vol_CB)
    pAC = probs(vol_AC, vol_CA)
    loss = jnp.float32(0.0)
    for xy, yz, xz in _LOSS_RECIPE:
        loss = loss + jnp.sum(jnp.maximum(0.0, pAB[xy] + pBC[yz] - pAC[xz]))
    for xy, yz, xz in _NEG_LOSS_RECIPE:
        loss = loss + jnp.sum(jnp.maximum(0.0, pAB[xy] + pBC[yz] - l1me(pAC[xz])))
    return loss


if __name__ == "__main__":
    key = jax.random.PRNGKey(0)

    def make_vols(k, batch):
        ks = jax.random.split(k, 6)
        # log of probabilities in (0, 1): valid inputs for log1mexp.
        return [jnp.log(jax.random.uniform(kk, (batch,), dtype=jnp.float32,
                                           minval=0.05, maxval=0.95))
                for kk in ks]

    # batch=37 exercises heavy tail padding inside one tile; batch=2000
    # exercises the >=2-tile (megacore) path plus padding.
    for case_key, batch in zip(jax.random.split(key, 2), (37, 2000)):
        vols = make_vols(case_key, batch)
        out = jax.block_until_ready(box_same_category_loss(*vols))
        ref = _reference(*vols)
        assert out.shape == ()
        assert jnp.allclose(out, ref, rtol=1e-4, atol=1e-2), (batch, out, ref)
    print("KERNEL_OK")
</pallas_src>

<mosaic_0001>
module attributes {stable_mosaic.version = 11 : i64} {
  func.func @_box_loss_kernel(%arg0: i32, %arg1: memref<6x8x128xf32, #tpu.memory_space<vmem>>, %arg2: memref<8x128xf32, #tpu.memory_space<vmem>>) attributes {dimension_semantics = [#tpu.dimension_semantics<parallel>], iteration_bounds = array<i64: 1>, scalar_prefetch = 0 : i64, scratch_operands = 0 : i64, tpu.core_type = #tpu.core_type<tc>, window_params = [{transform_indices = @transform_0, window_bounds = array<i64: 6, 8, 128>}, {transform_indices = @transform_1, window_bounds = array<i64: 8, 128>}]} {
    %c0 = arith.constant 0 : index
    %c0_0 = arith.constant 0 : index
    %c0_1 = arith.constant 0 : index
    %0 = vector.load %arg1[%c0, %c0_0, %c0_1] : memref<6x8x128xf32, #tpu.memory_space<vmem>>, vector<1x8x128xf32>
    %1 = vector.shape_cast %0 : vector<1x8x128xf32> to vector<8x128xf32>
    %c1 = arith.constant 1 : index
    %c0_2 = arith.constant 0 : index
    %c0_3 = arith.constant 0 : index
    %2 = vector.load %arg1[%c1, %c0_2, %c0_3] : memref<6x8x128xf32, #tpu.memory_space<vmem>>, vector<1x8x128xf32>
    %3 = vector.shape_cast %2 : vector<1x8x128xf32> to vector<8x128xf32>
    %c2 = arith.constant 2 : index
    %c0_4 = arith.constant 0 : index
    %c0_5 = arith.constant 0 : index
    %4 = vector.load %arg1[%c2, %c0_4, %c0_5] : memref<6x8x128xf32, #tpu.memory_space<vmem>>, vector<1x8x128xf32>
    %5 = vector.shape_cast %4 : vector<1x8x128xf32> to vector<8x128xf32>
    %c3 = arith.constant 3 : index
    %c0_6 = arith.constant 0 : index
    %c0_7 = arith.constant 0 : index
    %6 = vector.load %arg1[%c3, %c0_6, %c0_7] : memref<6x8x128xf32, #tpu.memory_space<vmem>>, vector<1x8x128xf32>
    %7 = vector.shape_cast %6 : vector<1x8x128xf32> to vector<8x128xf32>
    %c4 = arith.constant 4 : index
    %c0_8 = arith.constant 0 : index
    %c0_9 = arith.constant 0 : index
    %8 = vector.load %arg1[%c4, %c0_8, %c0_9] : memref<6x8x128xf32, #tpu.memory_space<vmem>>, vector<1x8x128xf32>
    %9 = vector.shape_cast %8 : vector<1x8x128xf32> to vector<8x128xf32>
    %c5 = arith.constant 5 : index
    %c0_10 = arith.constant 0 : index
    %c0_11 = arith.constant 0 : index
    %10 = vector.load %arg1[%c5, %c0_10, %c0_11] : memref<6x8x128xf32, #tpu.memory_space<vmem>>, vector<1x8x128xf32>
    %11 = vector.shape_cast %10 : vector<1x8x128xf32> to vector<8x128xf32>
    %cst = arith.constant -8.000000e+01 : f32
    %12 = vector.broadcast %cst : f32 to vector<8x128xf32>
    %13 = arith.maximumf %1, %12 : vector<8x128xf32>
    %14 = math.exp %13 : vector<8x128xf32>
    %cst_12 = arith.constant 1.000000e+00 : f32
    %15 = vector.broadcast %cst_12 : f32 to vector<8x128xf32>
    %16 = arith.subf %14, %15 : vector<8x128xf32>
    %cst_13 = arith.constant 0.000000e+00 : f32
    %17 = vector.broadcast %cst_13 : f32 to vector<8x128xf32>
    %18 = arith.cmpf oeq, %16, %17 : vector<8x128xf32>
    %19 = arith.mulf %16, %13 : vector<8x128xf32>
    %20 = math.log %14 : vector<8x128xf32>
    %21 = arith.divf %19, %20 : vector<8x128xf32>
    %22 = arith.select %18, %13, %21 : vector<8x128xi1>, vector<8x128xf32>
    %cst_14 = arith.constant 0.000000e+00 : f32
    %23 = vector.broadcast %cst_14 : f32 to vector<8x128xf32>
    %24 = arith.subf %23, %22 : vector<8x128xf32>
    %25 = math.log %24 : vector<8x128xf32>
    %cst_15 = arith.constant -8.000000e+01 : f32
    %26 = vector.broadcast %cst_15 : f32 to vector<8x128xf32>
    %27 = arith.maximumf %3, %26 : vector<8x128xf32>
    %28 = math.exp %27 : vector<8x128xf32>
    %cst_16 = arith.constant 1.000000e+00 : f32
    %29 = vector.broadcast %cst_16 : f32 to vector<8x128xf32>
    %30 = arith.subf %28, %29 : vector<8x128xf32>
    %cst_17 = arith.constant 0.000000e+00 : f32
    %31 = vector.broadcast %cst_17 : f32 to vector<8x128xf32>
    %32 = arith.cmpf oeq, %30, %31 : vector<8x128xf32>
    %33 = arith.mulf %30, %27 : vector<8x128xf32>
    %34 = math.log %28 : vector<8x128xf32>
    %35 = arith.divf %33, %34 : vector<8x128xf32>
    %36 = arith.select %32, %27, %35 : vector<8x128xi1>, vector<8x128xf32>
    %cst_18 = arith.constant 0.000000e+00 : f32
    %37 = vector.broadcast %cst_18 : f32 to vector<8x128xf32>
    %38 = arith.subf %37, %36 : vector<8x128xf32>
    %39 = math.log %38 : vector<8x128xf32>
    %cst_19 = arith.constant -8.000000e+01 : f32
    %40 = vector.broadcast %cst_19 : f32 to vector<8x128xf32>
    %41 = arith.maximumf %5, %40 : vector<8x128xf32>
    %42 = math.exp %41 : vector<8x128xf32>
    %cst_20 = arith.constant 1.000000e+00 : f32
    %43 = vector.broadcast %cst_20 : f32 to vector<8x128xf32>
    %44 = arith.subf %42, %43 : vector<8x128xf32>
    %cst_21 = arith.constant 0.000000e+00 : f32
    %45 = vector.broadcast %cst_21 : f32 to vector<8x128xf32>
    %46 = arith.cmpf oeq, %44, %45 : vector<8x128xf32>
    %47 = arith.mulf %44, %41 : vector<8x128xf32>
    %48 = math.log %42 : vector<8x128xf32>
    %49 = arith.divf %47, %48 : vector<8x128xf32>
    %50 = arith.select %46, %41, %49 : vector<8x128xi1>, vector<8x128xf32>
    %cst_22 = arith.constant 0.000000e+00 : f32
    %51 = vector.broadcast %cst_22 : f32 to vector<8x128xf32>
    %52 = arith.subf %51, %50 : vector<8x128xf32>
    %53 = math.log %52 : vector<8x128xf32>
    %cst_23 = arith.constant -8.000000e+01 : f32
    %54 = vector.broadcast %cst_23 : f32 to vector<8x128xf32>
    %55 = arith.maximumf %7, %54 : vector<8x128xf32>
    %56 = math.exp %55 : vector<8x128xf32>
    %cst_24 = arith.constant 1.000000e+00 : f32
    %57 = vector.broadcast %cst_24 : f32 to vector<8x128xf32>
    %58 = arith.subf %56, %57 : vector<8x128xf32>
    %cst_25 = arith.constant 0.000000e+00 : f32
    %59 = vector.broadcast %cst_25 : f32 to vector<8x128xf32>
    %60 = arith.cmpf oeq, %58, %59 : vector<8x128xf32>
    %61 = arith.mulf %58, %55 : vector<8x128xf32>
    %62 = math.log %56 : vector<8x128xf32>
    %63 = arith.divf %61, %62 : vector<8x128xf32>
    %64 = arith.select %60, %55, %63 : vector<8x128xi1>, vector<8x128xf32>
    %cst_26 = arith.constant 0.000000e+00 : f32
    %65 = vector.broadcast %cst_26 : f32 to vector<8x128xf32>
    %66 = arith.subf %65, %64 : vector<8x128xf32>
    %67 = math.log %66 : vector<8x128xf32>
    %cst_27 = arith.constant -8.000000e+01 : f32
    %68 = vector.broadcast %cst_27 : f32 to vector<8x128xf32>
    %69 = arith.maximumf %9, %68 : vector<8x128xf32>
    %70 = math.exp %69 : vector<8x128xf32>
    %cst_28 = arith.constant 1.000000e+00 : f32
    %71 = vector.broadcast %cst_28 : f32 to vector<8x128xf32>
    %72 = arith.subf %70, %71 : vector<8x128xf32>
    %cst_29 = arith.constant 0.000000e+00 : f32
    %73 = vector.broadcast %cst_29 : f32 to vector<8x128xf32>
    %74 = arith.cmpf oeq, %72, %73 : vector<8x128xf32>
    %75 = arith.mulf %72, %69 : vector<8x128xf32>
    %76 = math.log %70 : vector<8x128xf32>
    %77 = arith.divf %75, %76 : vector<8x128xf32>
    %78 = arith.select %74, %69, %77 : vector<8x128xi1>, vector<8x128xf32>
    %cst_30 = arith.constant 0.000000e+00 : f32
    %79 = vector.broadcast %cst_30 : f32 to vector<8x128xf32>
    %80 = arith.subf %79, %78 : vector<8x128xf32>
    %81 = math.log %80 : vector<8x128xf32>
    %cst_31 = arith.constant -8.000000e+01 : f32
    %82 = vector.broadcast %cst_31 : f32 to vector<8x128xf32>
    %83 = arith.maximumf %11, %82 : vector<8x128xf32>
    %84 = math.exp %83 : vector<8x128xf32>
    %cst_32 = arith.constant 1.000000e+00 : f32
    %85 = vector.broadcast %cst_32 : f32 to vector<8x128xf32>
    %86 = arith.subf %84, %85 : vector<8x128xf32>
    %cst_33 = arith.constant 0.000000e+00 : f32
    %87 = vector.broadcast %cst_33 : f32 to vector<8x128xf32>
    %88 = arith.cmpf oeq, %86, %87 : vector<8x128xf32>
    %89 = arith.mulf %86, %83 : vector<8x128xf32>
    %90 = math.log %84 : vector<8x128xf32>
    %91 = arith.divf %89, %90 : vector<8x128xf32>
    %92 = arith.select %88, %83, %91 : vector<8x128xi1>, vector<8x128xf32>
    %cst_34 = arith.constant 0.000000e+00 : f32
    %93 = vector.broadcast %cst_34 : f32 to vector<8x128xf32>
    %94 = arith.subf %93, %92 : vector<8x128xf32>
    %95 = math.log %94 : vector<8x128xf32>
    %96 = arith.addf %1, %39 : vector<8x128xf32>
    %97 = arith.addf %25, %3 : vector<8x128xf32>
    %98 = arith.addf %1, %3 : vector<8x128xf32>
    %99 = arith.addf %25, %39 : vector<8x128xf32>
    %100 = arith.addf %5, %67 : vector<8x128xf32>
    %101 = arith.addf %53, %7 : vector<8x128xf32>
    %102 = arith.addf %5, %7 : vector<8x128xf32>
    %103 = arith.addf %53, %67 : vector<8x128xf32>
    %104 = arith.addf %9, %95 : vector<8x128xf32>
    %105 = arith.addf %81, %11 : vector<8x128xf32>
    %106 = arith.addf %9, %11 : vector<8x128xf32>
    %107 = arith.addf %81, %95 : vector<8x128xf32>
    %108 = math.exp %104 : vector<8x128xf32>
    %109 = math.exp %105 : vector<8x128xf32>
    %110 = math.exp %106 : vector<8x128xf32>
    %111 = math.exp %107 : vector<8x128xf32>
    %112 = arith.addf %109, %110 : vector<8x128xf32>
    %113 = arith.addf %112, %111 : vector<8x128xf32>
    %cst_35 = arith.constant 1.17549435E-38 : f32
    %114 = vector.broadcast %cst_35 : f32 to vector<8x128xf32>
    %115 = arith.maximumf %113, %114 : vector<8x128xf32>
    %116 = math.log %115 : vector<8x128xf32>
    %117 = arith.addf %108, %110 : vector<8x128xf32>
    %118 = arith.addf %117, %111 : vector<8x128xf32>
    %cst_36 = arith.constant 1.17549435E-38 : f32
    %119 = vector.broadcast %cst_36 : f32 to vector<8x128xf32>
    %120 = arith.maximumf %118, %119 : vector<8x128xf32>
    %121 = math.log %120 : vector<8x128xf32>
    %122 = arith.addf %108, %109 : vector<8x128xf32>
    %123 = arith.addf %122, %111 : vector<8x128xf32>
    %cst_37 = arith.constant 1.17549435E-38 : f32
    %124 = vector.broadcast %cst_37 : f32 to vector<8x128xf32>
    %125 = arith.maximumf %123, %124 : vector<8x128xf32>
    %126 = math.log %125 : vector<8x128xf32>
    %cst_38 = arith.constant 0.000000e+00 : f32
    %127 = vector.broadcast %cst_38 : f32 to vector<8x128xf32>
    %128 = arith.addf %96, %100 : vector<8x128xf32>
    %129 = arith.subf %128, %104 : vector<8x128xf32>
    %cst_39 = arith.constant 0.000000e+00 : f32
    %130 = vector.broadcast %cst_39 : f32 to vector<8x128xf32>
    %131 = arith.maximumf %130, %129 : vector<8x128xf32>
    %132 = arith.addf %127, %131 : vector<8x128xf32>
    %133 = arith.addf %96, %102 : vector<8x128xf32>
    %134 = arith.subf %133, %104 : vector<8x128xf32>
    %cst_40 = arith.constant 0.000000e+00 : f32
    %135 = vector.broadcast %cst_40 : f32 to vector<8x128xf32>
    %136 = arith.maximumf %135, %134 : vector<8x128xf32>
    %137 = arith.addf %132, %136 : vector<8x128xf32>
    %138 = arith.addf %97, %101 : vector<8x128xf32>
    %139 = arith.subf %138, %105 : vector<8x128xf32>
    %cst_41 = arith.constant 0.000000e+00 : f32
    %140 = vector.broadcast %cst_41 : f32 to vector<8x128xf32>
    %141 = arith.maximumf %140, %139 : vector<8x128xf32>
    %142 = arith.addf %137, %141 : vector<8x128xf32>
    %143 = arith.addf %97, %102 : vector<8x128xf32>
    %144 = arith.subf %143, %105 : vector<8x128xf32>
    %cst_42 = arith.constant 0.000000e+00 : f32
    %145 = vector.broadcast %cst_42 : f32 to vector<8x128xf32>
    %146 = arith.maximumf %145, %144 : vector<8x128xf32>
    %147 = arith.addf %142, %146 : vector<8x128xf32>
    %148 = arith.addf %98, %100 : vector<8x128xf32>
    %149 = arith.subf %148, %104 : vector<8x128xf32>
    %cst_43 = arith.constant 0.000000e+00 : f32
    %150 = vector.broadcast %cst_43 : f32 to vector<8x128xf32>
    %151 = arith.maximumf %150, %149 : vector<8x128xf32>
    %152 = arith.addf %147, %151 : vector<8x128xf32>
    %153 = arith.addf %98, %101 : vector<8x128xf32>
    %154 = arith.subf %153, %105 : vector<8x128xf32>
    %cst_44 = arith.constant 0.000000e+00 : f32
    %155 = vector.broadcast %cst_44 : f32 to vector<8x128xf32>
    %156 = arith.maximumf %155, %154 : vector<8x128xf32>
    %157 = arith.addf %152, %156 : vector<8x128xf32>
    %158 = arith.addf %98, %102 : vector<8x128xf32>
    %159 = arith.subf %158, %106 : vector<8x128xf32>
    %cst_45 = arith.constant 0.000000e+00 : f32
    %160 = vector.broadcast %cst_45 : f32 to vector<8x128xf32>
    %161 = arith.maximumf %160, %159 : vector<8x128xf32>
    %162 = arith.addf %157, %161 : vector<8x128xf32>
    %163 = arith.addf %98, %103 : vector<8x128xf32>
    %164 = arith.subf %163, %107 : vector<8x128xf32>
    %cst_46 = arith.constant 0.000000e+00 : f32
    %165 = vector.broadcast %cst_46 : f32 to vector<8x128xf32>
    %166 = arith.maximumf %165, %164 : vector<8x128xf32>
    %167 = arith.addf %162, %166 : vector<8x128xf32>
    %168 = arith.addf %99, %102 : vector<8x128xf32>
    %169 = arith.subf %168, %107 : vector<8x128xf32>
    %cst_47 = arith.constant 0.000000e+00 : f32
    %170 = vector.broadcast %cst_47 : f32 to vector<8x128xf32>
    %171 = arith.maximumf %170, %169 : vector<8x128xf32>
    %172 = arith.addf %167, %171 : vector<8x128xf32>
    %173 = arith.addf %96, %103 : vector<8x128xf32>
    %174 = arith.subf %173, %121 : vector<8x128xf32>
    %cst_48 = arith.constant 0.000000e+00 : f32
    %175 = vector.broadcast %cst_48 : f32 to vector<8x128xf32>
    %176 = arith.maximumf %175, %174 : vector<8x128xf32>
    %177 = arith.addf %172, %176 : vector<8x128xf32>
    %178 = arith.addf %96, %103 : vector<8x128xf32>
    %179 = arith.subf %178, %126 : vector<8x128xf32>
    %cst_49 = arith.constant 0.000000e+00 : f32
    %180 = vector.broadcast %cst_49 : f32 to vector<8x128xf32>
    %181 = arith.maximumf %180, %179 : vector<8x128xf32>
    %182 = arith.addf %177, %181 : vector<8x128xf32>
    %183 = arith.addf %97, %103 : vector<8x128xf32>
    %184 = arith.subf %183, %116 : vector<8x128xf32>
    %cst_50 = arith.constant 0.000000e+00 : f32
    %185 = vector.broadcast %cst_50 : f32 to vector<8x128xf32>
    %186 = arith.maximumf %185, %184 : vector<8x128xf32>
    %187 = arith.addf %182, %186 : vector<8x128xf32>
    %188 = arith.addf %97, %103 : vector<8x128xf32>
    %189 = arith.subf %188, %126 : vector<8x128xf32>
    %cst_51 = arith.constant 0.000000e+00 : f32
    %190 = vector.broadcast %cst_51 : f32 to vector<8x128xf32>
    %191 = arith.maximumf %190, %189 : vector<8x128xf32>
    %192 = arith.addf %187, %191 : vector<8x128xf32>
    %193 = arith.addf %99, %100 : vector<8x128xf32>
    %194 = arith.subf %193, %121 : vector<8x128xf32>
    %cst_52 = arith.constant 0.000000e+00 : f32
    %195 = vector.broadcast %cst_52 : f32 to vector<8x128xf32>
    %196 = arith.maximumf %195, %194 : vector<8x128xf32>
    %197 = arith.addf %192, %196 : vector<8x128xf32>
    %198 = arith.addf %99, %100 : vector<8x128xf32>
    %199 = arith.subf %198, %126 : vector<8x128xf32>
    %cst_53 = arith.constant 0.000000e+00 : f32
    %200 = vector.broadcast %cst_53 : f32 to vector<8x128xf32>
    %201 = arith.maximumf %200, %199 : vector<8x128xf32>
    %202 = arith.addf %197, %201 : vector<8x128xf32>
    %203 = arith.addf %99, %101 : vector<8x128xf32>
    %204 = arith.subf %203, %116 : vector<8x128xf32>
    %cst_54 = arith.constant 0.000000e+00 : f32
    %205 = vector.broadcast %cst_54 : f32 to vector<8x128xf32>
    %206 = arith.maximumf %205, %204 : vector<8x128xf32>
    %207 = arith.addf %202, %206 : vector<8x128xf32>
    %208 = arith.addf %99, %101 : vector<8x128xf32>
    %209 = arith.subf %208, %126 : vector<8x128xf32>
    %cst_55 = arith.constant 0.000000e+00 : f32
    %210 = vector.broadcast %cst_55 : f32 to vector<8x128xf32>
    %211 = arith.maximumf %210, %209 : vector<8x128xf32>
    %212 = arith.addf %207, %211 : vector<8x128xf32>
    %213 = vector.shape_cast %212 : vector<8x128xf32> to vector<1x8x128xf32>
    %cst_56 = arith.constant dense<0.000000e+00> : vector<8x128xf32>
    %214 = vector.multi_reduction <add>, %213, %cst_56 [0] : vector<1x8x128xf32> to vector<8x128xf32>
    %c0_57 = arith.constant 0 : index
    %c0_58 = arith.constant 0 : index
    %215 = vector.load %arg2[%c0_57, %c0_58] : memref<8x128xf32, #tpu.memory_space<vmem>>, vector<8x128xf32>
    tpu.vector_store %arg2[%c0_57, %c0_58], %214 {strides = array<i32>} : memref<8x128xf32, #tpu.memory_space<vmem>>, vector<8x128xf32>,
    return
  }
  func.func @transform_0(%arg0: i32) -> (i32, i32, i32) {
    %c0_i32 = arith.constant 0 : i32
    %c0_i32_0 = arith.constant 0 : i32
    %c0_i32_1 = arith.constant 0 : i32
    return %c0_i32, %arg0, %c0_i32_0 : i32, i32, i32
  }
  func.func @transform_1(%arg0: i32) -> (i32, i32) {
    %c0_i32 = arith.constant 0 : i32
    %c0_i32_0 = arith.constant 0 : i32
    return %arg0, %c0_i32 : i32, i32
  }
}

</mosaic_0001>

<bundles_post_ra>
// kernel: tpu_custom_call.1
= control target key start
LH: loop header
LB: loop body
LE: loop exit
PB: predicated region body
PF: predicated region fallthrough
CT: control target
= control target key end

     0   :  { %6 = vsyncpa [#allocation3], 0  ;;  %s711_s0 = inlined_call_operand.hbm [shape: f32[6,8,128], index: 0, kind: input, shape index: {}]   ;;  %s712_s1 = inlined_call_operand.hbm [shape: f32[8,128], index: 1, kind: output, shape index: {}]  }
   0x1   :  { %7 = vsyncpa [#allocation4], 0  ;;  %s12_s8 = sshll.u32 %s711_s0, 4  ;;  %s440_s9 = smov [#allocation2]   ;;  %s13_s8 = int_to_ptr.hbm [resolvable:$true] %s12_s8 }
   0x2   :  { %s14_s10 = sshll.u32 %s440_s9, 4  ;;  %s441_s11 = smov 128   ;;  %s15_s10 = int_to_ptr.vmem [resolvable:$true] %s14_s10 }
   0x3   :  { %s442_s12 = smov 8  }
   0x4   :  { %20 = dma.hbm_to_vmem [thread:$0]  %s13_s8, 768, %s15_s10, [#allocation3], %s441_s11, %s441_s11, %s442_s12  }
   0x5   :  { %436 = dma.done.wait [#allocation3], 768  }
   0x6   :  { %437 = vsyncadd [#allocation3], 4294966528  ;;  %v457_v0 = vld [vmem:[#allocation2] sm:$0xff]  ;;  %v459_v1 = vld [vmem:[#allocation2 + $0x8] sm:$0xff]  ;;  %s443_s0 = smov [#allocation5]   ;;  %s306_s16 = sshll.u32 %s712_s1, 4  ;;  %s307_s16 = int_to_ptr.hbm [resolvable:$true] %s306_s16 }
   0x7   :  { %v461_v2 = vld [vmem:[#allocation2 + $0x10] sm:$0xff]  ;;  %v463_v3 = vld [vmem:[#allocation2 + $0x18] sm:$0xff]  ;;  %v465_v4 = vld [vmem:[#allocation2 + $0x20] sm:$0xff]  ;;  %v470_v6 = vmax.f32 %v457_v0, -80.0  ;;  %v473_v7 = vmax.f32 %v459_v1, -80.0  ;;  %s304_s13 = sshll.u32 %s443_s0, 4  ;;  %s305_s13 = int_to_ptr.vmem [resolvable:$true] %s304_s13 }
   0x8   :  { %v467_v5 = vld [vmem:[#allocation2 + $0x28] sm:$0xff]  ;;  %v476_v8 = vmax.f32 %v461_v2, -80.0  ;;  %v479_v9 = vmax.f32 %v463_v3, -80.0  ;;  %v482_v10 = vmax.f32 %v465_v4, -80.0 }
   0x9   :  { %v485_v11 = vmax.f32 %v467_v5, -80.0  ;;  %v37_v12 = vmul.f32 1.442695, %v470_v6  ;;  %v64_v13 = vmul.f32 1.442695, %v473_v7 }
   0xa   :  { %v91_v14 = vmul.f32 1.442695, %v476_v8  ;;  %v118_v15 = vmul.f32 1.442695, %v479_v9  ;;  %v145_v16 = vmul.f32 1.442695, %v482_v10 }
   0xb   :  { %326 = vpow2.f32 %v37_v12  ;;  %v172_v17 = vmul.f32 1.442695, %v485_v11 }
   0xc   :  { %328 = vpow2.f32 %v64_v13 }
   0xd   :  { %330 = vpow2.f32 %v91_v14 }
   0xe   :  { %332 = vpow2.f32 %v118_v15 }
   0xf   :  { %334 = vpow2.f32 %v145_v16 }
  0x10   :  { %336 = vpow2.f32 %v172_v17 }
  0x11   :  { %v327_v18 = vpop.eup %326 }
  0x12   :  { %v329_v19 = vpop.eup %328  ;;  %338 = vlog2.f32 %v327_v18  ;;  %v493_v24 = vadd.f32 -1.0, %v327_v18 }
  0x13   :  { %v331_v20 = vpop.eup %330  ;;  %340 = vlog2.f32 %v329_v19  ;;  %v495_v26 = vadd.f32 -1.0, %v329_v19 }
  0x14   :  { %v333_v21 = vpop.eup %332  ;;  %342 = vlog2.f32 %v331_v20  ;;  %v499_v29 = vadd.f32 -1.0, %v331_v20  ;;  %v509_v35 = vmul.f32 %v493_v24, %v470_v6 }
  0x15   :  { %v335_v22 = vpop.eup %334  ;;  %344 = vlog2.f32 %v333_v21  ;;  %v503_v32 = vadd.f32 -1.0, %v333_v21  ;;  %v518_v40 = vmul.f32 %v495_v26, %v473_v7 }
  0x16   :  { %v337_v23 = vpop.eup %336  ;;  %346 = vlog2.f32 %v335_v22  ;;  %v505_v33 = vadd.f32 -1.0, %v335_v22  ;;  %v524_v43 = vmul.f32 %v499_v29, %v476_v8 }
  0x17   :  { %348 = vlog2.f32 %v337_v23  ;;  %v512_v36 = vadd.f32 -1.0, %v337_v23  ;;  %v533_v47 = vmul.f32 %v503_v32, %v479_v9  ;;  %vm121_vm14 = vcmp.eq.f32.partialorder %v503_v32, 0.0 }
  0x18   :  { %v339_v25 = vpop.eup %338  ;;  %v537_v48 = vmul.f32 %v505_v33, %v482_v10  ;;  %vm148_vm8 = vcmp.eq.f32.partialorder %v505_v33, 0.0 }
  0x19   :  { %v341_v27 = vpop.eup %340  ;;  %v497_v28 = vmul.f32 0.6931472, %v339_v25  ;;  %v546_v50 = vmul.f32 %v512_v36, %v485_v11 }
  0x1a   :  { %v343_v30 = vpop.eup %342  ;;  %v501_v31 = vmul.f32 0.6931472, %v341_v27 }
  0x1b   :  { %v345_v34 = vpop.eup %344  ;;  %350 = vrcp.f32 %v497_v28  ;;  %v53_v38 = vand.u32 2147483647, %v497_v28  ;;  %v55_v39 = vand.u32 2147483648, %v497_v28  ;;  %v526_v44 = vmul.f32 0.6931472, %v343_v30 }
  0x1c   :  { %v347_v37 = vpop.eup %346  ;;  %352 = vrcp.f32 %v501_v31  ;;  %v80_v42 = vand.u32 2147483647, %v501_v31  ;;  %v528_v45 = vmul.f32 0.6931472, %v345_v34  ;;  %v82_v46 = vand.u32 2147483648, %v501_v31 }
  0x1d   :  { %v349_v41 = vpop.eup %348  ;;  %v539_v49 = vmul.f32 0.6931472, %v347_v37  ;;  %vm49_vm0 = vweird.f32 %v497_v28  ;;  %vm76_vm1 = vweird.f32 %v501_v31  ;;  %354 = vrcp.f32 %v526_v44 }
  0x1e   :  { %v107_v51 = vand.u32 2147483647, %v526_v44  ;;  %v109_v52 = vand.u32 2147483648, %v526_v44  ;;  %356 = vrcp.f32 %v528_v45  ;;  %v551_v53 = vmul.f32 0.6931472, %v349_v41 }
  0x1f   :  { %vm553_vm2 = vcmp.eq.f32.partialorder %v53_v38, 8.507059e+37  ;;  %v56_v56 = vor.u32 1.1754944e-38, %v55_v39  ;;  %vm557_vm3 = vcmp.eq.f32.partialorder %v80_v42, 8.507059e+37  ;;  %358 = vrcp.f32 %v539_v49 }
  0x20   :  { %v83_v60 = vor.u32 1.1754944e-38, %v82_v46  ;;  %v134_v61 = vand.u32 2147483647, %v528_v45  ;;  %v136_v62 = vand.u32 2147483648, %v528_v45  ;;  %vm103_vm5 = vweird.f32 %v526_v44 }
  0x21   :  { %v351_v54 = vpop.eup %350  ;;  %vm130_vm6 = vweird.f32 %v528_v45  ;;  %v161_v12 = vand.u32 2147483647, %v539_v49  ;;  %vm571_vm9 = vcmp.eq.f32.partialorder %v107_v51, 8.507059e+37  ;;  %v110_v15 = vor.u32 1.1754944e-38, %v109_v52 }
  0x22   :  { %v353_v58 = vpop.eup %352  ;;  %v45_v59 = vmul.f32 %v351_v54, %v497_v28  ;;  %vm50_vm7 = vweird.f32 %v351_v54  ;;  %360 = vrcp.f32 %v551_v53  ;;  %vm157_vm11 = vweird.f32 %v539_v49 }
  0x23   :  { %v72_v63 = vmul.f32 %v353_v58, %v501_v31  ;;  %v355_v16 = vpop.eup %354  ;;  %vm77_vm10 = vweird.f32 %v353_v58  ;;  %v163_v18 = vand.u32 2147483648, %v539_v49  ;;  %vm579_vm12 = vcmp.eq.f32.partialorder %v134_v61, 8.507059e+37  ;;  %vm586_vm13 = vmor %vm49_vm0, %vm50_vm7 }
  0x24   :  { %v46_v13 = vsub.f32 1.0, %v45_v59  ;;  %v357_v19 = vpop.eup %356  ;;  %v99_v21 = vmul.f32 %v355_v16, %v526_v44  ;;  %v137_v23 = vor.u32 1.1754944e-38, %v136_v62  ;;  %vm592_vm15 = vcmp.eq.f32.partialorder %v161_v12, 8.507059e+37  ;;  %vm601_vm0 = vmor %vm76_vm1, %vm77_vm10 }
  0x25   :  { %v73_v17 = vsub.f32 1.0, %v72_v63  ;;  %v359_v25 = vpop.eup %358  ;;  %v126_v34 = vmul.f32 %v357_v19, %v528_v45  ;;  %v188_v38 = vand.u32 2147483647, %v551_v53  ;;  %vm104_vm7 = vweird.f32 %v355_v16 }
  0x26   :  { %v47_v20 = vmul.f32 %v351_v54, %v46_v13  ;;  %v100_v41 = vsub.f32 1.0, %v99_v21  ;;  %v153_v42 = vmul.f32 %v359_v25, %v539_v49  ;;  %vm131_vm4 = vweird.f32 %v357_v19  ;;  %vm617_vm10 = vmor %vm103_vm5, %vm104_vm7 }
  0x27   :  { %v74_v30 = vmul.f32 %v353_v58, %v73_v17  ;;  %v127_v51 = vsub.f32 1.0, %v126_v34  ;;  %v164_v52 = vor.u32 1.1754944e-38, %v163_v18  ;;  %vm158_vm1 = vweird.f32 %v359_v25 }
  0x28   :  { %v48_v39 = vadd.f32 %v351_v54, %v47_v20  ;;  %v361_v59 = vpop.eup %360  ;;  %v101_v61 = vmul.f32 %v355_v16, %v100_v41  ;;  %v154_v62 = vsub.f32 1.0, %v153_v42  ;;  %vm635_vm5 = vmor %vm157_vm11, %vm158_vm1  ;;  %v190_v57 = vand.u32 2147483648, %v551_v53 }
  0x29   :  { %v75_v46 = vadd.f32 %v353_v58, %v74_v30  ;;  %v128_v17 = vmul.f32 %v357_v19, %v127_v51  ;;  %v180_v18 = vmul.f32 %v361_v59, %v551_v53  ;;  %vm736_vm11 = vweird.f32 %v551_v53 }
  0x2a   :  { %v52_v31 = vsel %vm586_vm13, %v351_v54, %v48_v39  ;;  %v102_v55 = vadd.f32 %v355_v16, %v101_v61  ;;  %v155_v44 = vmul.f32 %v359_v25, %v154_v62  ;;  %vm189_vm13 = vcmp.eq.f32.partialorder %v188_v38, 8.507059e+37 }
  0x2b   :  { %v57_v63 = vsel %vm553_vm2, %v56_v56, %v52_v31  ;;  %v79_v12 = vsel %vm601_vm0, %v353_v58, %v75_v46  ;;  %vm628_vm2 = vmor %vm130_vm6, %vm131_vm4  ;;  %v129_v21 = vadd.f32 %v357_v19, %v128_v17  ;;  %vm185_vm4 = vweird.f32 %v361_v59 }
  0x2c   :  { %v58_v54 = vmul.f32 %v57_v63, %v509_v35  ;;  %v84_v20 = vsel %vm557_vm3, %v83_v60, %v79_v12  ;;  %v181_v35 = vsub.f32 1.0, %v180_v18  ;;  %vm733_vm3 = vcmp.eq.f32.partialorder %v493_v24, 0.0 }
  0x2d   :  { %v85_v58 = vmul.f32 %v84_v20, %v518_v40  ;;  %v106_v60 = vsel %vm617_vm10, %v355_v16, %v102_v55  ;;  %v156_v30 = vadd.f32 %v359_v25, %v155_v44  ;;  %vm734_vm6 = vcmp.eq.f32.partialorder %v495_v26, 0.0 }
  0x2e   :  { %v59_v45 = vsel %vm733_vm3, %v470_v6, %v58_v54  ;;  %v111_v34 = vsel %vm571_vm9, %v110_v15, %v106_v60  ;;  %v133_v39 = vsel %vm628_vm2, %v357_v19, %v129_v21  ;;  %v182_v26 = vmul.f32 %v361_v59, %v181_v35 }
  0x2f   :  { %v60_v40 = vsub.f32 0.0, %v59_v45  ;;  %v86_v49 = vsel %vm734_vm6, %v473_v7, %v85_v58  ;;  %v112_v24 = vmul.f32 %v111_v34, %v524_v43  ;;  %v138_v6 = vsel %vm579_vm12, %v137_v23, %v133_v39  ;;  %vm186_vm12 = vmor %vm736_vm11, %vm185_vm4 }
  0x30   :  { %v87_v28 = vsub.f32 0.0, %v86_v49  ;;  %v160_v16 = vsel %vm635_vm5, %v359_v25, %v156_v30  ;;  %v139_v41 = vmul.f32 %v138_v6, %v533_v47  ;;  %vm735_vm9 = vcmp.eq.f32.partialorder %v499_v29, 0.0 }
  0x31   :  { %362 = vlog2.f32 %v60_v40  ;;  %v165_v7 = vsel %vm592_vm15, %v164_v52, %v160_v16  ;;  %v113_v14 = vsel %vm735_vm9, %v476_v8, %v112_v24  ;;  %v191_v15 = vor.u32 1.1754944e-38, %v190_v57 }
  0x32   :  { %364 = vlog2.f32 %v87_v28  ;;  %v166_v43 = vmul.f32 %v165_v7, %v537_v48  ;;  %v114_v19 = vsub.f32 0.0, %v113_v14  ;;  %v140_v47 = vsel %vm121_vm14, %v479_v9, %v139_v41 }
  0x33   :  { %v183_v22 = vadd.f32 %v361_v59, %v182_v26  ;;  %v141_v23 = vsub.f32 0.0, %v140_v47  ;;  %vm175_vm15 = vcmp.eq.f32.partialorder %v512_v36, 0.0  ;;  %v208_v31 = vadd.f32 %v467_v5, %v465_v4 }
  0x34   :  { %v167_v29 = vsel %vm148_vm8, %v482_v10, %v166_v43  ;;  %366 = vlog2.f32 %v114_v19  ;;  %v204_v63 = vadd.f32 %v463_v3, %v461_v2  ;;  %v200_v17 = vadd.f32 %v459_v1, %v457_v0 }
  0x35   :  { %v168_v8 = vsub.f32 0.0, %v167_v29  ;;  %v187_v48 = vsel %vm186_vm12, %v361_v59, %v183_v22  ;;  %368 = vlog2.f32 %v141_v23  ;;  %v214_v18 = vmul.f32 1.442695, %v208_v31 }
  0x36   :  { %v192_v53 = vsel %vm189_vm13, %v191_v15, %v187_v48  ;;  %v257_v34 = vadd.f32 %v204_v63, %v200_v17 }
  0x37   :  { %v363_v25 = vpop.eup %362  ;;  %370 = vlog2.f32 %v168_v8  ;;  %v193_v37 = vmul.f32 %v192_v53, %v546_v50 }
  0x38   :  { %v365_v32 = vpop.eup %364  ;;  %v62_v9 = vmul.f32 0.6931472, %v363_v25  ;;  %v258_v14 = vsub.f32 %v257_v34, %v208_v31 }
  0x39   :  { %v194_v38 = vsel %vm175_vm15, %v485_v11, %v193_v37  ;;  %v89_v51 = vmul.f32 0.6931472, %v365_v32 }
  0x3a   :  { %v195_v42 = vsub.f32 0.0, %v194_v38  ;;  %v367_v46 = vpop.eup %366  ;;  %v677_v52 = vadd.f32 %v62_v9, %v459_v1  ;;  %v259_v32 = vmax.f32 %v258_v14, 0.0 }
  0x3b   :  { %v369_v33 = vpop.eup %368  ;;  %v116_v10 = vmul.f32 0.6931472, %v367_v46  ;;  %v685_v11 = vadd.f32 %v89_v51, %v457_v0  ;;  %v201_v15 = vadd.f32 %v89_v51, %v62_v9 }
  0x3c   :  { %372 = vlog2.f32 %v195_v42  ;;  %v143_v36 = vmul.f32 0.6931472, %v369_v33  ;;  %v245_v55 = vadd.f32 %v204_v63, %v677_v52 }
  0x3d   :  { %v371_v59 = vpop.eup %370  ;;  %v682_v50 = vadd.f32 %v116_v10, %v463_v3  ;;  %v237_v58 = vadd.f32 %v204_v63, %v685_v11  ;;  %374 = vpow2.f32 %v214_v18  ;;  %v265_v33 = vadd.f32 %v204_v63, %v201_v15 }
  0x3e   :  { %v170_v61 = vmul.f32 0.6931472, %v371_v59  ;;  %v688_v62 = vadd.f32 %v143_v36, %v461_v2  ;;  %v205_v39 = vadd.f32 %v143_v36, %v116_v10 }
  0x3f   :  { %v241_v13 = vadd.f32 %v682_v50, %v677_v52  ;;  %v253_v1 = vadd.f32 %v682_v50, %v200_v17 }
  0x40   :  { %v207_v12 = vadd.f32 %v170_v61, %v467_v5  ;;  %v233_v44 = vadd.f32 %v688_v62, %v685_v11  ;;  %v249_v21 = vadd.f32 %v688_v62, %v200_v17  ;;  %v261_v22 = vadd.f32 %v205_v39, %v200_v17 }
  0x41   :  { %v276_v17 = vadd.f32 %v205_v39, %v677_v52 }
  0x42   :  { %v373_v54 = vpop.eup %372  ;;  %v212_v20 = vmul.f32 1.442695, %v207_v12  ;;  %v242_v2 = vsub.f32 %v241_v13, %v207_v12  ;;  %v246_v0 = vsub.f32 %v245_v55, %v207_v12  ;;  %v254_v6 = vsub.f32 %v253_v1, %v207_v12 }
  0x43   :  { %v197_v56 = vmul.f32 0.6931472, %v373_v54  ;;  %v269_v13 = vadd.f32 %v205_v39, %v685_v11  ;;  %v290_v11 = vadd.f32 %v682_v50, %v201_v15 }
  0x44   :  { %376 = vpow2.f32 %v212_v20  ;;  %v243_v60 = vmax.f32 %v242_v2, 0.0  ;;  %v247_v24 = vmax.f32 %v246_v0, 0.0  ;;  %v255_v47 = vmax.f32 %v254_v6, 0.0 }
  0x45   :  { %v206_v3 = vadd.f32 %v197_v56, %v465_v4  ;;  %v209_v5 = vadd.f32 %v197_v56, %v170_v61  ;;  %v375_v4 = vpop.eup %374  ;;  %v283_v2 = vadd.f32 %v688_v62, %v201_v15 }
  0x47   :  { %v210_v27 = vmul.f32 1.442695, %v206_v3  ;;  %v216_v35 = vmul.f32 1.442695, %v209_v5  ;;  %v234_v57 = vsub.f32 %v233_v44, %v206_v3  ;;  %v238_v45 = vsub.f32 %v237_v58, %v206_v3 }
  0x48   :  { %v250_v49 = vsub.f32 %v249_v21, %v206_v3  ;;  %v262_v46 = vsub.f32 %v261_v22, %v209_v5  ;;  %v266_v36 = vsub.f32 %v265_v33, %v209_v5 }
  0x49   :  { %378 = vpow2.f32 %v210_v27  ;;  %v235_v30 = vmax.f32 %v234_v57, 0.0  ;;  %v239_v40 = vmax.f32 %v238_v45, 0.0 }
  0x4a   :  { %380 = vpow2.f32 %v216_v35  ;;  %v377_v16 = vpop.eup %376  ;;  %v251_v26 = vmax.f32 %v250_v49, 0.0  ;;  %v263_v51 = vmax.f32 %v262_v46, 0.0  ;;  %v267_v12 = vmax.f32 %v266_v36, 0.0 }
  0x4b   :  { %v240_v28 = vadd.f32 %v239_v40, %v235_v30  ;;  %v218_v41 = vadd.f32 %v377_v16, %v375_v4 }
  0x4d   :  { %v244_v7 = vadd.f32 %v243_v60, %v240_v28 }
  0x4f   :  { %v379_v43 = vpop.eup %378  ;;  %v248_v19 = vadd.f32 %v247_v24, %v244_v7 }
  0x50   :  { %v381_v23 = vpop.eup %380  ;;  %v223_v29 = vadd.f32 %v379_v43, %v375_v4  ;;  %v228_v8 = vadd.f32 %v379_v43, %v377_v16 }
  0x51   :  { %v219_v48 = vadd.f32 %v381_v23, %v218_v41  ;;  %v252_v53 = vadd.f32 %v251_v26, %v248_v19 }
  0x52   :  { %v224_v25 = vadd.f32 %v381_v23, %v223_v29  ;;  %v229_v37 = vadd.f32 %v381_v23, %v228_v8 }
  0x53   :  { %v220_v38 = vmax.f32 %v219_v48, 1.1754944e-38  ;;  %v256_v42 = vadd.f32 %v255_v47, %v252_v53 }
  0x54   :  { %v225_v10 = vmax.f32 %v224_v25, 1.1754944e-38  ;;  %v230_v59 = vmax.f32 %v229_v37, 1.1754944e-38 }
  0x55   :  { %382 = vlog2.f32 %v220_v38  ;;  %v260_v9 = vadd.f32 %v259_v32, %v256_v42 }
  0x56   :  { %384 = vlog2.f32 %v225_v10 }
  0x57   :  { %386 = vlog2.f32 %v230_v59  ;;  %v264_v61 = vadd.f32 %v263_v51, %v260_v9 }
  0x59   :  { %v268_v56 = vadd.f32 %v267_v12, %v264_v61 }
  0x5b   :  { %v383_v31 = vpop.eup %382 }
  0x5c   :  { %v385_v18 = vpop.eup %384  ;;  %v222_v54 = vmul.f32 0.6931472, %v383_v31 }
  0x5d   :  { %v387_v20 = vpop.eup %386  ;;  %v227_v55 = vmul.f32 0.6931472, %v385_v18 }
  0x5e   :  { %v232_v63 = vmul.f32 0.6931472, %v387_v20  ;;  %v277_v58 = vsub.f32 %v276_v17, %v222_v54  ;;  %v291_v40 = vsub.f32 %v290_v11, %v222_v54 }
  0x5f   :  { %v270_v44 = vsub.f32 %v269_v13, %v227_v55  ;;  %v284_v35 = vsub.f32 %v283_v2, %v227_v55 }
  0x60   :  { %v273_v3 = vsub.f32 %v269_v13, %v232_v63  ;;  %v280_v5 = vsub.f32 %v276_v17, %v232_v63  ;;  %v278_v27 = vmax.f32 %v277_v58, 0.0  ;;  %v287_v45 = vsub.f32 %v283_v2, %v232_v63 }
  0x61   :  { %v271_v21 = vmax.f32 %v270_v44, 0.0  ;;  %v285_v30 = vmax.f32 %v284_v35, 0.0  ;;  %v294_v4 = vsub.f32 %v290_v11, %v232_v63  ;;  %v292_v62 = vmax.f32 %v291_v40, 0.0 }
  0x62   :  { %v274_v0 = vmax.f32 %v273_v3, 0.0  ;;  %v281_v57 = vmax.f32 %v280_v5, 0.0  ;;  %v288_v34 = vmax.f32 %v287_v45, 0.0 }
  0x63   :  { %v272_v1 = vadd.f32 %v271_v21, %v268_v56  ;;  %v295_v24 = vmax.f32 %v294_v4, 0.0 }
  0x65   :  { %v275_v52 = vadd.f32 %v274_v0, %v272_v1 }
  0x67   :  { %v279_v60 = vadd.f32 %v278_v27, %v275_v52 }
  0x69   :  { %v282_v49 = vadd.f32 %v281_v57, %v279_v60 }
  0x6b   :  { %v286_v39 = vadd.f32 %v285_v30, %v282_v49 }
  0x6d   :  { %v289_v28 = vadd.f32 %v288_v34, %v286_v39 }
  0x6f   :  { %v293_v50 = vadd.f32 %v292_v62, %v289_v28 }
  0x71   :  { %v296_v6 = vadd.f32 %v295_v24, %v293_v50 }
  0x73   :  { %298 = vst [vmem:[#allocation5] sm:$0xff] %v296_v6 }
  0x74   :  { %309 = dma.vmem_to_hbm [thread:$0]  %s305_s13, 128, %s307_s16, [#allocation4]  }
  0x75   :  { %438 = dma.done.wait [#allocation4], 128  }
  0x76   :  { %439 = vsyncadd [#allocation4], 4294967168 }
  0x77   :  { %314 = vsyncpa [#allocation3], 1 }
  0x78   :  { %315 = vsyncpa [#allocation4], 1 }

</bundles_post_ra>
